<compile_context>
chip_gen: v7x
topology: tpu7x:2x2x1
jax: 0.10.0
libtpu: 0.0.40
codegen_flags: <defaults>
</compile_context>

<pallas_src>
import functools

import jax
import jax.numpy as jnp
from jax.experimental import pallas as pl
from jax.experimental.pallas import tpu as pltpu

# ---------------- configuration (small, deterministic) ----------------
OBS_DIM = 32
STATE_DIM = 24
HIDDEN_DIM = 32          # SimpleModel hidden_dim
OBS_EMB_DIM = 16         # config_repr.obs_embedding_dim
STATE_EMB_DIM = 32       # config_repr.state_embedding_dim
POLICY_HIDDEN = (64, 64)  # config_actor.hidden_dims
ACTION_DIM = 6
ZERO_BOTTOM = False       # config_actor.zero_bottom

BATCH = 16
LANES = 128               # every weight is padded to 128 output lanes


def _rup8(n):
    return ((n + 7) // 8) * 8


# ---------------- fused Pallas kernel ----------------
def _actor_kernel(zero_bottom, off, obs_ref, st_ref, slab_ref, act_ref):
    """off: dict of static row offsets into the packed (R, 128) parameter slab."""

    def relu(x):
        return jnp.maximum(x, 0.0)

    def W(name, rows=LANES):
        o = off[name]                      # static, 8-aligned row offset
        return slab_ref[o:o + rows, :]     # (rows, 128) zero-padded weight block

    def B_(name):
        o = off[name]
        return slab_ref[o:o + 1, :]        # (1, 128) zero-padded bias row

    def mm(x, w):
        return jnp.dot(x, w, preferred_element_type=jnp.float32)

    def simple_model(x, in_rows, px):
        # input layer (weight stored with its true row count, 8-aligned)
        h = relu(mm(x, W(px + "w_in", in_rows)) + B_(px + "b_in"))
        # one residual linear block (one layer per block); padded lanes stay zero
        h = h + relu(mm(h, W(px + "w_r")) + B_(px + "b_r"))
        # output projection (valid in first emb_dim lanes, zero elsewhere)
        return mm(h, W(px + "w_out")) + B_(px + "b_out")

    embed_state = simple_model(st_ref[...], _rup8(STATE_DIM), "s")

    # policy layer 1, concat replaced by split matmuls summed on the VPU
    h1 = mm(embed_state, W("pw1_state")) + B_("pb1")
    if not zero_bottom:                    # static flag, resolved at trace time
        embed_obs = simple_model(obs_ref[...], _rup8(OBS_DIM), "o")
        h1 = h1 + mm(embed_obs, W("pw1_obs"))
    h1 = relu(h1)

    h2 = relu(mm(h1, W("pw2")) + B_("pb2"))
    logits = mm(h2, W("pw3")) + B_("pb3")
    act_ref[...] = jnp.tanh(logits[:, :ACTION_DIM])


# ---------------- host-side parameter packing (one slab, one DMA) ----------------
def pack_actor_params(p, zero_bottom=ZERO_BOTTOM):
    """Pack all weights/biases into one zero-padded (R, 128) f32 slab + static row offsets."""
    assert OBS_DIM % 8 == 0 and STATE_DIM % 8 == 0  # input-layer contraction dims must be 8-aligned

    blocks, offsets = [], {}
    row = 0

    def add(name, arr, rows):
        nonlocal row
        arr = jnp.asarray(arr, jnp.float32)
        r, c = arr.shape
        assert r <= rows and c <= LANES
        blk = jnp.zeros((rows, LANES), jnp.float32).at[:r, :c].set(arr)
        blocks.append(blk)
        offsets[name] = row
        row += rows

    if not zero_bottom:
        # observ_embedder (skipped entirely when zero_bottom)
        add("ow_in", p["ow_in"], _rup8(OBS_DIM))
        add("ob_in", p["ob_in"], 8)
        add("ow_r", p["ow_r"], LANES)
        add("ob_r", p["ob_r"], 8)
        add("ow_out", p["ow_out"], LANES)
        add("ob_out", p["ob_out"], 8)
        add("pw1_obs", p["pw1"][:OBS_EMB_DIM], LANES)   # top half of policy layer-1 weight

    # state_embedder
    add("sw_in", p["sw_in"], _rup8(STATE_DIM))
    add("sb_in", p["sb_in"], 8)
    add("sw_r", p["sw_r"], LANES)
    add("sb_r", p["sb_r"], 8)
    add("sw_out", p["sw_out"], LANES)
    add("sb_out", p["sb_out"], 8)

    # policy MLP
    add("pw1_state", p["pw1"][OBS_EMB_DIM:], LANES)     # bottom half of policy layer-1 weight
    add("pb1", p["pb1"], 8)
    add("pw2", p["pw2"], LANES)
    add("pb2", p["pb2"], 8)
    add("pw3", p["pw3"], LANES)
    add("pb3", p["pb3"], 8)

    slab = jnp.concatenate(blocks, axis=0)              # (R, 128), R multiple of 8, < 1 MiB
    return slab, offsets


# ---------------- wrapper ----------------
def actor_forward(observs, states, slab, offsets, *, zero_bottom=ZERO_BOTTOM, tb=None):
    """observs: (B, obs_dim), states: (B, state_dim) -> actions (B, action_dim)."""
    B = observs.shape[0]
    if tb is None:
        tb = B                # single grid step: total work is tiny, avoid per-step overhead
    assert B % tb == 0

    kernel = functools.partial(_actor_kernel, zero_bottom, offsets)

    flops = 2 * B * (
        (0 if zero_bottom else OBS_DIM * HIDDEN_DIM + HIDDEN_DIM * HIDDEN_DIM
         + HIDDEN_DIM * OBS_EMB_DIM + OBS_EMB_DIM * POLICY_HIDDEN[0])
        + STATE_DIM * HIDDEN_DIM + HIDDEN_DIM * HIDDEN_DIM + HIDDEN_DIM * STATE_EMB_DIM
        + STATE_EMB_DIM * POLICY_HIDDEN[0]
        + POLICY_HIDDEN[0] * POLICY_HIDDEN[1] + POLICY_HIDDEN[1] * ACTION_DIM)
    bytes_accessed = 4 * (observs.size + states.size + slab.size + B * ACTION_DIM)

    return pl.pallas_call(
        kernel,
        out_shape=jax.ShapeDtypeStruct((B, ACTION_DIM), jnp.float32),
        grid_spec=pltpu.PrefetchScalarGridSpec(
            num_scalar_prefetch=0,
            grid=(B // tb,),
            in_specs=[
                pl.BlockSpec((tb, observs.shape[1]), lambda i: (i, 0)),
                pl.BlockSpec((tb, states.shape[1]), lambda i: (i, 0)),
                pl.BlockSpec(slab.shape, lambda i: (0, 0)),   # one full-extent param slab
            ],
            out_specs=pl.BlockSpec((tb, ACTION_DIM), lambda i: (i, 0)),
        ),
        compiler_params=pltpu.CompilerParams(
            dimension_semantics=("parallel",)),
        cost_estimate=pl.CostEstimate(
            flops=flops,
            transcendentals=B * ACTION_DIM,
            bytes_accessed=bytes_accessed),
    )(observs, states, slab)


# ---------------- deterministic parameter init ----------------
def _init_params(key):
    def lin(key, fan_in, fan_out):
        kw, kb = jax.random.split(key)
        bound = 1.0 / jnp.sqrt(fan_in)
        w = jax.random.uniform(kw, (fan_in, fan_out), jnp.float32, -bound, bound)
        b = jax.random.uniform(kb, (1, fan_out), jnp.float32, -bound, bound)
        return w, b

    keys = jax.random.split(key, 9)
    p = {}
    # observ_embedder: SimpleModel(obs_dim -> OBS_EMB_DIM)
    p["ow_in"], p["ob_in"] = lin(keys[0], OBS_DIM, HIDDEN_DIM)
    p["ow_r"], p["ob_r"] = lin(keys[1], HIDDEN_DIM, HIDDEN_DIM)
    p["ow_out"], p["ob_out"] = lin(keys[2], HIDDEN_DIM, OBS_EMB_DIM)
    # state_embedder: SimpleModel(state_dim -> STATE_EMB_DIM)
    p["sw_in"], p["sb_in"] = lin(keys[3], STATE_DIM, HIDDEN_DIM)
    p["sw_r"], p["sb_r"] = lin(keys[4], HIDDEN_DIM, HIDDEN_DIM)
    p["sw_out"], p["sb_out"] = lin(keys[5], HIDDEN_DIM, STATE_EMB_DIM)
    # policy: (obs_emb + state_emb) -> hidden -> hidden -> action, tanh
    in_size = OBS_EMB_DIM + STATE_EMB_DIM
    p["pw1"], p["pb1"] = lin(keys[6], in_size, POLICY_HIDDEN[0])
    p["pw2"], p["pb2"] = lin(keys[7], POLICY_HIDDEN[0], POLICY_HIDDEN[1])
    p["pw3"], p["pb3"] = lin(keys[8], POLICY_HIDDEN[1], ACTION_DIM)
    return p


# ---------------- pure-JAX reference for verification ----------------
def _ref_forward(observs, states, p, zero_bottom=ZERO_BOTTOM):
    relu = lambda x: jnp.maximum(x, 0.0)

    def simple_model(x, w_in, b_in, w_r, b_r, w_out, b_out):
        h = relu(x @ w_in + b_in)
        h = h + relu(h @ w_r + b_r)
        return h @ w_out + b_out

    eo = simple_model(observs, p["ow_in"], p["ob_in"], p["ow_r"], p["ob_r"],
                      p["ow_out"], p["ob_out"])
    es = simple_model(states, p["sw_in"], p["sb_in"], p["sw_r"], p["sb_r"],
                      p["sw_out"], p["sb_out"])
    if zero_bottom:
        eo = jnp.zeros_like(eo)
    embed = jnp.concatenate([eo, es], axis=-1)
    h = relu(embed @ p["pw1"] + p["pb1"])
    h = relu(h @ p["pw2"] + p["pb2"])
    return jnp.tanh(h @ p["pw3"] + p["pb3"])


if __name__ == "__main__":
    key = jax.random.PRNGKey(0)
    k_obs, k_st, k_par = jax.random.split(key, 3)

    observs = jax.random.normal(k_obs, (BATCH, OBS_DIM), jnp.float32)
    states = jax.random.normal(k_st, (BATCH, STATE_DIM), jnp.float32)
    params = _init_params(k_par)

    # zero_bottom = False path (obs branch active)
    slab, off = pack_actor_params(params, zero_bottom=False)
    actions = jax.block_until_ready(
        actor_forward(observs, states, slab, off, zero_bottom=False))
    ref = _ref_forward(observs, states, params, zero_bottom=False)
    assert actions.shape == (BATCH, ACTION_DIM)
    assert jnp.allclose(actions, ref, atol=1e-5, rtol=1e-5)

    # zero_bottom = True path (obs branch statically removed from the compiled kernel)
    slab_zb, off_zb = pack_actor_params(params, zero_bottom=True)
    actions_zb = jax.block_until_ready(
        actor_forward(observs, states, slab_zb, off_zb, zero_bottom=True))
    ref_zb = _ref_forward(observs, states, params, zero_bottom=True)
    assert jnp.allclose(actions_zb, ref_zb, atol=1e-5, rtol=1e-5)

    # TODO(synk): image-encoder (SimpleModelCNN) branch and algo-specific stochastic
    # heads (SAC log-prob sampling in act()) are not exercised by this deterministic instantiation.
    print("KERNEL_OK")
</pallas_src>

<mosaic_0001>
module attributes {stable_mosaic.version = 11 : i64} {
  func.func @_actor_kernel(%arg0: i32, %arg1: memref<16x32xf32, #tpu.memory_space<vmem>>, %arg2: memref<16x24xf32, #tpu.memory_space<vmem>>, %arg3: memref<1152x128xf32, #tpu.memory_space<vmem>>, %arg4: memref<16x6xf32, #tpu.memory_space<vmem>>) attributes {dimension_semantics = [#tpu.dimension_semantics<parallel>], iteration_bounds = array<i64: 1>, scalar_prefetch = 0 : i64, scratch_operands = 0 : i64, tpu.core_type = #tpu.core_type<tc>, window_params = [{transform_indices = @transform_0, window_bounds = array<i64: 16, 32>}, {transform_indices = @transform_1, window_bounds = array<i64: 16, 24>}, {pipeline_mode = #tpu.pipeline_mode<synchronous>, transform_indices = @transform_2, window_bounds = array<i64: 1152, 128>}, {transform_indices = @transform_3, window_bounds = array<i64: 16, 6>}]} {
    %c0 = arith.constant 0 : index
    %c0_0 = arith.constant 0 : index
    %0 = vector.load %arg2[%c0, %c0_0] : memref<16x24xf32, #tpu.memory_space<vmem>>, vector<16x24xf32>
    %c440 = arith.constant 440 : index
    %c0_1 = arith.constant 0 : index
    %1 = vector.load %arg3[%c440, %c0_1] : memref<1152x128xf32, #tpu.memory_space<vmem>>, vector<24x128xf32>
    %cst = arith.constant dense<0.000000e+00> : vector<16x128xf32>
    %2 = tpu.matmul %0, %1, %cst {dimension_numbers = #tpu.dot_dimension_numbers<[1], [0], [0], [1], [0, 0, 1, 1], [], []>} : vector<16x24xf32>, vector<24x128xf32>, vector<16x128xf32> -> vector<16x128xf32>
    %c464 = arith.constant 464 : index
    %c0_2 = arith.constant 0 : index
    %3 = vector.load %arg3[%c464, %c0_2] : memref<1152x128xf32, #tpu.memory_space<vmem>>, vector<1x128xf32>
    %4 = vector.broadcast %3 : vector<1x128xf32> to vector<16x128xf32>
    %5 = arith.addf %2, %4 : vector<16x128xf32>
    %cst_3 = arith.constant 0.000000e+00 : f32
    %6 = vector.broadcast %cst_3 : f32 to vector<16x128xf32>
    %7 = arith.maximumf %5, %6 : vector<16x128xf32>
    %c472 = arith.constant 472 : index
    %c0_4 = arith.constant 0 : index
    %8 = vector.load %arg3[%c472, %c0_4] : memref<1152x128xf32, #tpu.memory_space<vmem>>, vector<128x128xf32>
    %cst_5 = arith.constant dense<0.000000e+00> : vector<16x128xf32>
    %9 = tpu.matmul %7, %8, %cst_5 {dimension_numbers = #tpu.dot_dimension_numbers<[1], [0], [0], [1], [0, 0, 1, 1], [], []>} : vector<16x128xf32>, vector<128x128xf32>, vector<16x128xf32> -> vector<16x128xf32>
    %c600 = arith.constant 600 : index
    %c0_6 = arith.constant 0 : index
    %10 = vector.load %arg3[%c600, %c0_6] : memref<1152x128xf32, #tpu.memory_space<vmem>>, vector<1x128xf32>
    %11 = vector.broadcast %10 : vector<1x128xf32> to vector<16x128xf32>
    %12 = arith.addf %9, %11 : vector<16x128xf32>
    %cst_7 = arith.constant 0.000000e+00 : f32
    %13 = vector.broadcast %cst_7 : f32 to vector<16x128xf32>
    %14 = arith.maximumf %12, %13 : vector<16x128xf32>
    %15 = arith.addf %7, %14 : vector<16x128xf32>
    %c608 = arith.constant 608 : index
    %c0_8 = arith.constant 0 : index
    %16 = vector.load %arg3[%c608, %c0_8] : memref<1152x128xf32, #tpu.memory_space<vmem>>, vector<128x128xf32>
    %cst_9 = arith.constant dense<0.000000e+00> : vector<16x128xf32>
    %17 = tpu.matmul %15, %16, %cst_9 {dimension_numbers = #tpu.dot_dimension_numbers<[1], [0], [0], [1], [0, 0, 1, 1], [], []>} : vector<16x128xf32>, vector<128x128xf32>, vector<16x128xf32> -> vector<16x128xf32>
    %c736 = arith.constant 736 : index
    %c0_10 = arith.constant 0 : index
    %18 = vector.load %arg3[%c736, %c0_10] : memref<1152x128xf32, #tpu.memory_space<vmem>>, vector<1x128xf32>
    %19 = vector.broadcast %18 : vector<1x128xf32> to vector<16x128xf32>
    %20 = arith.addf %17, %19 : vector<16x128xf32>
    %c744 = arith.constant 744 : index
    %c0_11 = arith.constant 0 : index
    %21 = vector.load %arg3[%c744, %c0_11] : memref<1152x128xf32, #tpu.memory_space<vmem>>, vector<128x128xf32>
    %cst_12 = arith.constant dense<0.000000e+00> : vector<16x128xf32>
    %22 = tpu.matmul %20, %21, %cst_12 {dimension_numbers = #tpu.dot_dimension_numbers<[1], [0], [0], [1], [0, 0, 1, 1], [], []>} : vector<16x128xf32>, vector<128x128xf32>, vector<16x128xf32> -> vector<16x128xf32>
    %c872 = arith.constant 872 : index
    %c0_13 = arith.constant 0 : index
    %23 = vector.load %arg3[%c872, %c0_13] : memref<1152x128xf32, #tpu.memory_space<vmem>>, vector<1x128xf32>
    %24 = vector.broadcast %23 : vector<1x128xf32> to vector<16x128xf32>
    %25 = arith.addf %22, %24 : vector<16x128xf32>
    %c0_14 = arith.constant 0 : index
    %c0_15 = arith.constant 0 : index
    %26 = vector.load %arg1[%c0_14, %c0_15] : memref<16x32xf32, #tpu.memory_space<vmem>>, vector<16x32xf32>
    %c0_16 = arith.constant 0 : index
    %c0_17 = arith.constant 0 : index
    %27 = vector.load %arg3[%c0_16, %c0_17] : memref<1152x128xf32, #tpu.memory_space<vmem>>, vector<32x128xf32>
    %cst_18 = arith.constant dense<0.000000e+00> : vector<16x128xf32>
    %28 = tpu.matmul %26, %27, %cst_18 {dimension_numbers = #tpu.dot_dimension_numbers<[1], [0], [0], [1], [0, 0, 1, 1], [], []>} : vector<16x32xf32>, vector<32x128xf32>, vector<16x128xf32> -> vector<16x128xf32>
    %c32 = arith.constant 32 : index
    %c0_19 = arith.constant 0 : index
    %29 = vector.load %arg3[%c32, %c0_19] : memref<1152x128xf32, #tpu.memory_space<vmem>>, vector<1x128xf32>
    %30 = vector.broadcast %29 : vector<1x128xf32> to vector<16x128xf32>
    %31 = arith.addf %28, %30 : vector<16x128xf32>
    %cst_20 = arith.constant 0.000000e+00 : f32
    %32 = vector.broadcast %cst_20 : f32 to vector<16x128xf32>
    %33 = arith.maximumf %31, %32 : vector<16x128xf32>
    %c40 = arith.constant 40 : index
    %c0_21 = arith.constant 0 : index
    %34 = vector.load %arg3[%c40, %c0_21] : memref<1152x128xf32, #tpu.memory_space<vmem>>, vector<128x128xf32>
    %cst_22 = arith.constant dense<0.000000e+00> : vector<16x128xf32>
    %35 = tpu.matmul %33, %34, %cst_22 {dimension_numbers = #tpu.dot_dimension_numbers<[1], [0], [0], [1], [0, 0, 1, 1], [], []>} : vector<16x128xf32>, vector<128x128xf32>, vector<16x128xf32> -> vector<16x128xf32>
    %c168 = arith.constant 168 : index
    %c0_23 = arith.constant 0 : index
    %36 = vector.load %arg3[%c168, %c0_23] : memref<1152x128xf32, #tpu.memory_space<vmem>>, vector<1x128xf32>
    %37 = vector.broadcast %36 : vector<1x128xf32> to vector<16x128xf32>
    %38 = arith.addf %35, %37 : vector<16x128xf32>
    %cst_24 = arith.constant 0.000000e+00 : f32
    %39 = vector.broadcast %cst_24 : f32 to vector<16x128xf32>
    %40 = arith.maximumf %38, %39 : vector<16x128xf32>
    %41 = arith.addf %33, %40 : vector<16x128xf32>
    %c176 = arith.constant 176 : index
    %c0_25 = arith.constant 0 : index
    %42 = vector.load %arg3[%c176, %c0_25] : memref<1152x128xf32, #tpu.memory_space<vmem>>, vector<128x128xf32>
    %cst_26 = arith.constant dense<0.000000e+00> : vector<16x128xf32>
    %43 = tpu.matmul %41, %42, %cst_26 {dimension_numbers = #tpu.dot_dimension_numbers<[1], [0], [0], [1], [0, 0, 1, 1], [], []>} : vector<16x128xf32>, vector<128x128xf32>, vector<16x128xf32> -> vector<16x128xf32>
    %c304 = arith.constant 304 : index
    %c0_27 = arith.constant 0 : index
    %44 = vector.load %arg3[%c304, %c0_27] : memref<1152x128xf32, #tpu.memory_space<vmem>>, vector<1x128xf32>
    %45 = vector.broadcast %44 : vector<1x128xf32> to vector<16x128xf32>
    %46 = arith.addf %43, %45 : vector<16x128xf32>
    %c312 = arith.constant 312 : index
    %c0_28 = arith.constant 0 : index
    %47 = vector.load %arg3[%c312, %c0_28] : memref<1152x128xf32, #tpu.memory_space<vmem>>, vector<128x128xf32>
    %cst_29 = arith.constant dense<0.000000e+00> : vector<16x128xf32>
    %48 = tpu.matmul %46, %47, %cst_29 {dimension_numbers = #tpu.dot_dimension_numbers<[1], [0], [0], [1], [0, 0, 1, 1], [], []>} : vector<16x128xf32>, vector<128x128xf32>, vector<16x128xf32> -> vector<16x128xf32>
    %49 = arith.addf %25, %48 : vector<16x128xf32>
    %cst_30 = arith.constant 0.000000e+00 : f32
    %50 = vector.broadcast %cst_30 : f32 to vector<16x128xf32>
    %51 = arith.maximumf %49, %50 : vector<16x128xf32>
    %c880 = arith.constant 880 : index
    %c0_31 = arith.constant 0 : index
    %52 = vector.load %arg3[%c880, %c0_31] : memref<1152x128xf32, #tpu.memory_space<vmem>>, vector<128x128xf32>
    %cst_32 = arith.constant dense<0.000000e+00> : vector<16x128xf32>
    %53 = tpu.matmul %51, %52, %cst_32 {dimension_numbers = #tpu.dot_dimension_numbers<[1], [0], [0], [1], [0, 0, 1, 1], [], []>} : vector<16x128xf32>, vector<128x128xf32>, vector<16x128xf32> -> vector<16x128xf32>
    %c1008 = arith.constant 1008 : index
    %c0_33 = arith.constant 0 : index
    %54 = vector.load %arg3[%c1008, %c0_33] : memref<1152x128xf32, #tpu.memory_space<vmem>>, vector<1x128xf32>
    %55 = vector.broadcast %54 : vector<1x128xf32> to vector<16x128xf32>
    %56 = arith.addf %53, %55 : vector<16x128xf32>
    %cst_34 = arith.constant 0.000000e+00 : f32
    %57 = vector.broadcast %cst_34 : f32 to vector<16x128xf32>
    %58 = arith.maximumf %56, %57 : vector<16x128xf32>
    %c1016 = arith.constant 1016 : index
    %c0_35 = arith.constant 0 : index
    %59 = vector.load %arg3[%c1016, %c0_35] : memref<1152x128xf32, #tpu.memory_space<vmem>>, vector<128x128xf32>
    %cst_36 = arith.constant dense<0.000000e+00> : vector<16x128xf32>
    %60 = tpu.matmul %58, %59, %cst_36 {dimension_numbers = #tpu.dot_dimension_numbers<[1], [0], [0], [1], [0, 0, 1, 1], [], []>} : vector<16x128xf32>, vector<128x128xf32>, vector<16x128xf32> -> vector<16x128xf32>
    %c1144 = arith.constant 1144 : index
    %c0_37 = arith.constant 0 : index
    %61 = vector.load %arg3[%c1144, %c0_37] : memref<1152x128xf32, #tpu.memory_space<vmem>>, vector<1x128xf32>
    %62 = vector.broadcast %61 : vector<1x128xf32> to vector<16x128xf32>
    %63 = arith.addf %60, %62 : vector<16x128xf32>
    %64 = vector.extract_strided_slice %63 {offsets = [0, 0], sizes = [16, 6], strides = [1, 1]} : vector<16x128xf32> to vector<16x6xf32>
    %65 = math.tanh %64 : vector<16x6xf32>
    %c0_38 = arith.constant 0 : index
    %c0_39 = arith.constant 0 : index
    %66 = vector.load %arg4[%c0_38, %c0_39] : memref<16x6xf32, #tpu.memory_space<vmem>>, vector<16x6xf32>
    tpu.vector_store %arg4[%c0_38, %c0_39], %65 {strides = array<i32>} : memref<16x6xf32, #tpu.memory_space<vmem>>, vector<16x6xf32>,
    return
  }
  func.func @transform_0(%arg0: i32) -> (i32, i32) {
    %c0_i32 = arith.constant 0 : i32
    %c0_i32_0 = arith.constant 0 : i32
    return %arg0, %c0_i32 : i32, i32
  }
  func.func @transform_1(%arg0: i32) -> (i32, i32) {
    %c0_i32 = arith.constant 0 : i32
    %c0_i32_0 = arith.constant 0 : i32
    return %arg0, %c0_i32 : i32, i32
  }
  func.func @transform_2(%arg0: i32) -> (i32, i32) {
    %c0_i32 = arith.constant 0 : i32
    %c0_i32_0 = arith.constant 0 : i32
    %c0_i32_1 = arith.constant 0 : i32
    return %c0_i32, %c0_i32_0 : i32, i32
  }
  func.func @transform_3(%arg0: i32) -> (i32, i32) {
    %c0_i32 = arith.constant 0 : i32
    %c0_i32_0 = arith.constant 0 : i32
    return %arg0, %c0_i32 : i32, i32
  }
}

</mosaic_0001>

<bundles_post_ra>
// kernel: tpu_custom_call.1
= control target key start
LH: loop header
LB: loop body
LE: loop exit
PB: predicated region body
PF: predicated region fallthrough
CT: control target
= control target key end

     0   :  { %8 = vsyncpa [#allocation3], 0  ;;  %s1944_s0 = inlined_call_operand.hbm [shape: f32[16,32], index: 0, kind: input, shape index: {}]   ;;  %s1945_s1 = inlined_call_operand.hbm [shape: f32[16,24], index: 1, kind: input, shape index: {}]   ;;  %s1946_s2 = inlined_call_operand.hbm [shape: f32[1152,128], index: 2, kind: input, shape index: {}]   ;;  %s1947_s3 = inlined_call_operand.vmem [shape: f32[16,6], index: 3, kind: output, shape index: {}]  }
   0x1   :  { %9 = vsyncpa [#allocation5], 0  ;;  %s1851_s12 = smov [#allocation4]   ;;  %s1852_s14 = smov [#allocation2]  }
   0x2   :  { %s27_s13 = sshll.u32 %s1851_s12, 4  ;;  %s15_s15 = sshll.u32 %s1852_s14, 4  ;;  %s28_s13 = int_to_ptr.vmem [resolvable:$true] %s27_s13  ;;  %s1876_s15 = int_to_ptr.vmem [resolvable:$true] %s15_s15 }
   0x3   :  { %s1781_s18 = scalar_lea.hbm %s1945_s1, 256 }
   0x4   :  { %p1782_p0 = scmp.ne.s32.totalorder %s1945_s1, %s1781_s18  ;;  %p1785_p1 = scmp.lt.u32.totalorder %s1781_s18, %s1945_s1 }
   0x6   :  { %p1787_p2 = pnand %p1785_p1, %p1782_p0 }
   0x8   :  { %1790 = shalt.err (!%p1787_p2)
}
   0x9   :  { %s1791_s23 = scalar_lea.vmem %s28_s13, 256  ;;  %p1796_p4 = scmp.lt.s32.totalorder %s28_s13, %s28_s13 }
   0xa   :  { %p1792_p3 = scmp.ne.s32.totalorder %s28_s13, %s1791_s23  ;;  %p1797_p5 = scmp.lt.s32.totalorder %s1791_s23, %s1791_s23 }
   0xc   :  { %p1798_p6 = por %p1797_p5, %p1796_p4 }
   0xe   :  { %p1799_p7 = pnand %p1798_p6, %p1792_p3 }
  0x10   :  { %1802 = shalt.err (!%p1799_p7)
}
  0x11   :  { %s1853_s24 = smov 128   ;;  %s1854_s25 = smov 8  }
  0x12   :  { %33 = dma.hbm_to_vmem [thread:$0]  %s1945_s1, 256, %s28_s13, [#allocation5], %s1853_s24, %s1853_s24, %s1854_s25  }
  0x13   :  { %s1803_s30 = scalar_lea.hbm %s1944_s0, 256 }
  0x14   :  { %p1804_p8 = scmp.ne.s32.totalorder %s1944_s0, %s1803_s30  ;;  %p1807_p9 = scmp.lt.u32.totalorder %s1803_s30, %s1944_s0 }
  0x16   :  { %p1809_p10 = pnand %p1807_p9, %p1804_p8 }
  0x18   :  { %1812 = shalt.err (!%p1809_p10)
}
  0x19   :  { %s1813_s8 = scalar_lea.vmem %s1876_s15, 256  ;;  %p1818_p12 = scmp.lt.s32.totalorder %s1876_s15, %s1876_s15 }
  0x1a   :  { %p1814_p11 = scmp.ne.s32.totalorder %s1876_s15, %s1813_s8  ;;  %p1819_p13 = scmp.lt.s32.totalorder %s1813_s8, %s1813_s8 }
  0x1c   :  { %p1820_p0 = por %p1819_p13, %p1818_p12 }
  0x1e   :  { %p1821_p1 = pnand %p1820_p0, %p1814_p11 }
  0x20   :  { %1824 = shalt.err (!%p1821_p1)
}
  0x21   :  { %21 = dma.hbm_to_vmem [thread:$0]  %s1944_s0, 256, %s1876_s15, [#allocation3], %s1853_s24, %s1853_s24, %s1854_s25  }
  0x22   :  { %s1855_s10 = smov [#allocation6]   ;;  %s1825_s14 = scalar_lea.hbm %s1946_s2, 18432 }
  0x23   :  { %s39_s11 = sshll.u32 %s1855_s10, 4  ;;  %p1826_p2 = scmp.ne.s32.totalorder %s1946_s2, %s1825_s14  ;;  %s40_s11 = int_to_ptr.vmem [resolvable:$true] %s39_s11 }
  0x24   :  { %p1829_p3 = scmp.lt.u32.totalorder %s1825_s14, %s1946_s2 }
  0x26   :  { %p1831_p4 = pnand %p1829_p3, %p1826_p2 }
  0x28   :  { %1834 = shalt.err (!%p1831_p4)
}
  0x29   :  { %s1835_s20 = scalar_lea.vmem %s40_s11, 18432  ;;  %p1840_p6 = scmp.lt.s32.totalorder %s40_s11, %s40_s11 }
  0x2a   :  { %p1836_p5 = scmp.ne.s32.totalorder %s40_s11, %s1835_s20  ;;  %p1841_p7 = scmp.lt.s32.totalorder %s1835_s20, %s1835_s20 }
  0x2c   :  { %p1842_p8 = por %p1841_p7, %p1840_p6 }
  0x2e   :  { %p1843_p9 = pnand %p1842_p8, %p1836_p5 }
  0x30   :  { %1846 = shalt.err (!%p1843_p9)
}
  0x31   :  { %45 = dma.hbm_to_vmem [thread:$0]  %s1946_s2, 18432, %s40_s11, [#allocation5], %s1853_s24, %s1853_s24, %s1854_s25  }
  0x32   :  { %1847 = dma.done.wait [#allocation3], 256  }
  0x33   :  { %1848 = vsyncadd [#allocation3], 4294967040 }
  0x34   :  { %1849 = dma.done.wait [#allocation5], 18688  }
  0x35   :  { %1850 = vsyncadd [#allocation5], 4294948608  ;;  %vm65_vm0 = vcmask 195584   ;;  %v57_v0 = vld [vmem:[#allocation6 + $0x1b8] sm:$0xff]  ;;  %v58_v1 = vld [vmem:[#allocation6 + $0x1c0] sm:$0xff]  ;;  %vm452_vm1 = vcmask 261120  }
  0x36   :  { %v1500_v2 = vpack.c.bf16 %v58_v1, %v57_v0  ;;  %v55_v3 = vld [vmem:[#allocation4] sm:$0xff]  ;;  %v59_v4 = vld [vmem:[#allocation6 + $0x1c8] sm:$0xff]  ;;  %v149_v5 = vld [vmem:[#allocation6 + $0x1d8] sm:$0xff]  ;;  %vm1023_vm2 = vcmask 48128  }
  0x37   :  { %1206 = vmatprep.mubr.msk.f32.mxu1 %vm65_vm0, %v55_v3  ;;  %v150_v6 = vld [vmem:[#allocation6 + $0x1e0] sm:$0xff]  ;;  %v151_v7 = vld [vmem:[#allocation6 + $0x1e8] sm:$0xff]  ;;  %v152_v8 = vld [vmem:[#allocation6 + $0x1f0] sm:$0xff] }
  0x38   :  { %1501 = vmatprep.subr.bf16.mxu1 %v1500_v2  ;;  %v1504_v9 = vpack.c.bf16 %v150_v6, %v149_v5  ;;  %v56_v10 = vld [vmem:[#allocation4 + $0x8] sm:$0xff]  ;;  %v1508_v11 = vpack.c.bf16 %v152_v8, %v151_v7  ;;  %v154_v13 = vld [vmem:[#allocation6 + $0x200] sm:$0xff]  ;;  %v155_v15 = vld [vmem:[#allocation6 + $0x208] sm:$0xff] }
  0x39   :  { %1503 = vmatpush3.bf16.msra.mxu1 %v1500_v2  ;;  %v153_v12 = vld [vmem:[#allocation6 + $0x1f8] sm:$0xff]  ;;  %v156_v16 = vld [vmem:[#allocation6 + $0x210] sm:$0xff]  ;;  %v158_v19 = vld [vmem:[#allocation6 + $0x220] sm:$0xff] }
  0x3a   :  { %1204 = vmatprep.subr.mxu1 %v59_v4  ;;  %v1512_v14 = vpack.c.bf16 %v154_v13, %v153_v12  ;;  %v1516_v17 = vpack.c.bf16 %v156_v16, %v155_v15  ;;  %v157_v18 = vld [vmem:[#allocation6 + $0x218] sm:$0xff]  ;;  %v159_v21 = vld [vmem:[#allocation6 + $0x228] sm:$0xff]  ;;  %v160_v22 = vld [vmem:[#allocation6 + $0x230] sm:$0xff] }
  0x3b   :  { %v1520_v20 = vpack.c.bf16 %v158_v19, %v157_v18  ;;  %v1524_v23 = vpack.c.bf16 %v160_v22, %v159_v21  ;;  %v161_v24 = vld [vmem:[#allocation6 + $0x238] sm:$0xff]  ;;  %v162_v25 = vld [vmem:[#allocation6 + $0x240] sm:$0xff]  ;;  %v163_v27 = vld [vmem:[#allocation6 + $0x248] sm:$0xff] }
  0x3c   :  { %v1528_v26 = vpack.c.bf16 %v162_v25, %v161_v24  ;;  %v164_v28 = vld [vmem:[#allocation6 + $0x250] sm:$0xff]  ;;  %v249_v30 = vld [vmem:[#allocation6 + $0x260] sm:$0xff]  ;;  %v250_v31 = vld [vmem:[#allocation6 + $0x268] sm:$0xff] }
  0x3d   :  { %1205 = vmatpush3.msra.mxu1 %v59_v4  ;;  %v1532_v29 = vpack.c.bf16 %v164_v28, %v163_v27  ;;  %v251_v32 = vld [vmem:[#allocation6 + $0x270] sm:$0xff]  ;;  %v1536_v33 = vpack.c.bf16 %v250_v31, %v249_v30  ;;  %v252_v34 = vld [vmem:[#allocation6 + $0x278] sm:$0xff]  ;;  %v253_v36 = vld [vmem:[#allocation6 + $0x280] sm:$0xff] }
  0x3e   :  { %1207 = vmatmul.mubr.msk.f32.vlgmr.msra.gmra.mrb[0].mxu1 %vm65_vm0, %v56_v10  ;;  %1505 = vmatprep.subr.bf16.mxu1 %v1504_v9  ;;  %v1540_v35 = vpack.c.bf16 %v252_v34, %v251_v32  ;;  %v254_v37 = vld [vmem:[#allocation6 + $0x288] sm:$0xff]  ;;  %v255_v39 = vld [vmem:[#allocation6 + $0x290] sm:$0xff]  ;;  %v256_v40 = vld [vmem:[#allocation6 + $0x298] sm:$0xff] }
  0x3f   :  { %1507 = vmatpush3.bf16.msra.mxu1 %v1504_v9  ;;  %1537 = vmatprep.subr.bf16.mxu0 %v1536_v33  ;;  %v1544_v38 = vpack.c.bf16 %v254_v37, %v253_v36  ;;  %v1548_v41 = vpack.c.bf16 %v256_v40, %v255_v39  ;;  %v257_v42 = vld [vmem:[#allocation6 + $0x2a0] sm:$0xff]  ;;  %v258_v43 = vld [vmem:[#allocation6 + $0x2a8] sm:$0xff]  ;;  %v259_v45 = vld [vmem:[#allocation6 + $0x2b0] sm:$0xff] }
  0x40   :  { %1509 = vmatprep.subr.bf16.mxu1 %v1508_v11  ;;  %1539 = vmatpush3.bf16.msra.mxu0 %v1536_v33  ;;  %v1552_v44 = vpack.c.bf16 %v258_v43, %v257_v42  ;;  %v260_v46 = vld [vmem:[#allocation6 + $0x2b8] sm:$0xff]  ;;  %v1032_v48 = vld [vmem:[#allocation6 + $0x1d0] ss:$0 sm:$0xff]  ;;  %v261_v55 = vld [vmem:[#allocation6 + $0x2c0] sm:$0xff] }
  0x41   :  { %1541 = vmatprep.subr.bf16.mxu0 %v1540_v35  ;;  %v1556_v47 = vpack.c.bf16 %v260_v46, %v259_v45  ;;  %v262_v56 = vld [vmem:[#allocation6 + $0x2c8] sm:$0xff]  ;;  %v263_v58 = vld [vmem:[#allocation6 + $0x2d0] sm:$0xff]  ;;  %v264_v59 = vld [vmem:[#allocation6 + $0x2d8] sm:$0xff] }
  0x42   :  { %v1560_v57 = vpack.c.bf16 %v262_v56, %v261_v55  ;;  %v1564_v60 = vpack.c.bf16 %v264_v59, %v263_v58  ;;  %v443_v61 = vld [vmem:[#allocation6] sm:$0xff]  ;;  %v444_v62 = vld [vmem:[#allocation6 + $0x8] sm:$0xff]  ;;  %v346_v1 = vld [vmem:[#allocation6 + $0x2f0] sm:$0xff] }
  0x43   :  { %1511 = vmatpush3.bf16.msra.mxu1 %v1508_v11  ;;  %v1600_v63 = vpack.c.bf16 %v444_v62, %v443_v61  ;;  %v345_v0 = vld [vmem:[#allocation6 + $0x2e8] sm:$0xff]  ;;  %v347_v2 = vld [vmem:[#allocation6 + $0x2f8] sm:$0xff]  ;;  %v348_v4 = vld [vmem:[#allocation6 + $0x300] sm:$0xff] }
  0x44   :  { %1513 = vmatprep.subr.bf16.mxu1 %v1512_v14  ;;  %1543 = vmatpush3.bf16.msra.mxu0 %v1540_v35  ;;  %v1568_v3 = vpack.c.bf16 %v346_v1, %v345_v0  ;;  %v1572_v5 = vpack.c.bf16 %v348_v4, %v347_v2  ;;  %v349_v6 = vld [vmem:[#allocation6 + $0x308] sm:$0xff]  ;;  %v350_v7 = vld [vmem:[#allocation6 + $0x310] sm:$0xff]  ;;  %v351_v9 = vld [vmem:[#allocation6 + $0x318] sm:$0xff] }
  0x45   :  { %1545 = vmatprep.subr.bf16.mxu0 %v1544_v38  ;;  %v1576_v8 = vpack.c.bf16 %v350_v7, %v349_v6  ;;  %v352_v10 = vld [vmem:[#allocation6 + $0x320] sm:$0xff]  ;;  %v353_v12 = vld [vmem:[#allocation6 + $0x328] sm:$0xff]  ;;  %v354_v13 = vld [vmem:[#allocation6 + $0x330] sm:$0xff] }
  0x46   :  { %v1580_v11 = vpack.c.bf16 %v352_v10, %v351_v9  ;;  %v355_v15 = vld [vmem:[#allocation6 + $0x338] sm:$0xff]  ;;  %v356_v16 = vld [vmem:[#allocation6 + $0x340] sm:$0xff]  ;;  %v357_v18 = vld [vmem:[#allocation6 + $0x348] sm:$0xff] }
  0x47   :  { %1515 = vmatpush3.bf16.msra.mxu1 %v1512_v14  ;;  %v1584_v14 = vpack.c.bf16 %v354_v13, %v353_v12  ;;  %v358_v19 = vld [vmem:[#allocation6 + $0x350] sm:$0xff]  ;;  %v1035_v21 = vld [vmem:[#allocation6 + $0x258] ss:$0 sm:$0xff]  ;;  %v441_v33 = vld [vmem:[#allocation2] sm:$0xff] }
  0x48   :  { %1517 = vmatprep.subr.bf16.mxu1 %v1516_v17  ;;  %1547 = vmatpush3.bf16.msra.mxu0 %v1544_v38  ;;  %v445_v28 = vld [vmem:[#allocation6 + $0x10] sm:$0xff]  ;;  %v536_v34 = vld [vmem:[#allocation6 + $0x28] sm:$0xff]  ;;  %v538_v37 = vld [vmem:[#allocation6 + $0x38] sm:$0xff] }
  0x49   :  { %1549 = vmatprep.subr.bf16.mxu0 %v1548_v41  ;;  %v537_v35 = vld [vmem:[#allocation6 + $0x30] sm:$0xff]  ;;  %v539_v38 = vld [vmem:[#allocation6 + $0x40] sm:$0xff]  ;;  %v442_v39 = vld [vmem:[#allocation2 + $0x8] sm:$0xff] }
  0x4a   :  { %v1608_v36 = vpack.c.bf16 %v537_v35, %v536_v34  ;;  %v1612_v40 = vpack.c.bf16 %v539_v38, %v538_v37  ;;  %v541_v42 = vld [vmem:[#allocation6 + $0x50] sm:$0xff]  ;;  %v543_v45 = vld [vmem:[#allocation6 + $0x60] sm:$0xff]  ;;  %v548_v56 = vld [vmem:[#allocation6 + $0x88] sm:$0xff] }
  0x4b   :  { %1519 = vmatpush3.bf16.msra.mxu1 %v1516_v17  ;;  %v1588_v17 = vpack.c.bf16 %v356_v16, %v355_v15  ;;  %v550_v59 = vld [vmem:[#allocation6 + $0x98] sm:$0xff]  ;;  %v636_v62 = vld [vmem:[#allocation6 + $0xb0] sm:$0xff]  ;;  %v1036_v1 = vld [vmem:[#allocation6 + $0x2e0] ss:$0 sm:$0xff] }
  0x4c   :  { %1521 = vmatprep.subr.bf16.mxu1 %v1520_v20  ;;  %1551 = vmatpush3.bf16.msra.mxu0 %v1548_v41  ;;  %v540_v41 = vld [vmem:[#allocation6 + $0x48] sm:$0xff]  ;;  %v640_v9 = vld [vmem:[#allocation6 + $0xd0] sm:$0xff]  ;;  %v641_v10 = vld [vmem:[#allocation6 + $0xd8] sm:$0xff] }
  0x4d   :  { %1553 = vmatprep.subr.bf16.mxu0 %v1552_v44  ;;  %v1616_v43 = vpack.c.bf16 %v541_v42, %v540_v41  ;;  %v639_v4 = vld [vmem:[#allocation6 + $0xc8] sm:$0xff]  ;;  %v1648_v12 = vpack.c.bf16 %v641_v10, %v640_v9  ;;  %v732_v34 = vld [vmem:[#allocation6 + $0x138] sm:$0xff]  ;;  %v733_v35 = vld [vmem:[#allocation6 + $0x140] sm:$0xff] }
  0x4e   :  { %v643_v15 = vld [vmem:[#allocation6 + $0xe8] sm:$0xff]  ;;  %v831_v9 = vld [vmem:[#allocation6 + $0x390] sm:$0xff]  ;;  %v832_v10 = vld [vmem:[#allocation6 + $0x398] sm:$0xff] }
  0x4f   :  { %1523 = vmatpush3.bf16.msra.mxu1 %v1520_v20  ;;  %v1592_v20 = vpack.c.bf16 %v358_v19, %v357_v18  ;;  %v1041_v37 = vld [vmem:[#allocation6 + $0xa8] ss:$0 sm:$0xff] }
  0x50   :  { %1525 = vmatprep.subr.bf16.mxu1 %v1524_v23  ;;  %1555 = vmatpush3.bf16.msra.mxu0 %v1552_v44  ;;  %v542_v44 = vld [vmem:[#allocation6 + $0x58] sm:$0xff] }
  0x51   :  { %1557 = vmatprep.subr.bf16.mxu0 %v1556_v47  ;;  %v1620_v46 = vpack.c.bf16 %v543_v45, %v542_v44  ;;  %v734_v44 = vld [vmem:[#allocation6 + $0x148] sm:$0xff]  ;;  %v735_v45 = vld [vmem:[#allocation6 + $0x150] sm:$0xff] }
  0x53   :  { %1527 = vmatpush3.bf16.msra.mxu1 %v1524_v23 }
  0x54   :  { %1529 = vmatprep.subr.bf16.mxu1 %v1528_v26  ;;  %1559 = vmatpush3.bf16.msra.mxu0 %v1556_v47  ;;  %v544_v47 = vld [vmem:[#allocation6 + $0x68] sm:$0xff] }
  0x55   :  { %1561 = vmatprep.subr.bf16.mxu0 %v1560_v57 }
  0x57   :  { %1531 = vmatpush3.bf16.msra.mxu1 %v1528_v26 }
  0x58   :  { %1533 = vmatprep.subr.bf16.mxu1 %v1532_v29  ;;  %1563 = vmatpush3.bf16.msra.mxu0 %v1560_v57  ;;  %v549_v57 = vld [vmem:[#allocation6 + $0x90] sm:$0xff] }
  0x59   :  { %1565 = vmatprep.subr.bf16.mxu0 %v1564_v60  ;;  %v1632_v58 = vpack.c.bf16 %v549_v57, %v548_v56  ;;  %v741_v56 = vld [vmem:[#allocation6 + $0x180] sm:$0xff] }
  0x5b   :  { %1535 = vmatpush3.bf16.msra.mxu1 %v1532_v29  ;;  %v446_v29 = vld [vmem:[#allocation6 + $0x18] sm:$0xff] }
  0x5c   :  { %1567 = vmatpush3.bf16.msra.mxu0 %v1564_v60  ;;  %1569 = vmatprep.subr.bf16.mxu1 %v1568_v3  ;;  %v1604_v32 = vpack.c.bf16 %v446_v29, %v445_v28  ;;  %v551_v60 = vld [vmem:[#allocation6 + $0xa0] sm:$0xff]  ;;  %v648_v28 = vld [vmem:[#allocation6 + $0x110] sm:$0xff]  ;;  %v649_v29 = vld [vmem:[#allocation6 + $0x118] sm:$0xff] }
  0x5d   :  { %1601 = vmatprep.subr.bf16.mxu0 %v1600_v63  ;;  %v1636_v61 = vpack.c.bf16 %v551_v60, %v550_v59  ;;  %v743_v59 = vld [vmem:[#allocation6 + $0x190] sm:$0xff] }
 0x111   :  { %v1208_v49 = vpop.f32.mrb[0].mxu1 }
 0x112   :  { %v1930_v50 = vadd.f32 %v1208_v49, %v1032_v48  ;;  %v138_v51 = vpop.f32.mrb[1].mxu1 }
 0x113   :  { %v1932_v52 = vadd.f32 %v1032_v48, %v138_v51  ;;  %v545_v48 = vld [vmem:[#allocation6 + $0x70] sm:$0xff]  ;;  %v360_v51 = vld [vmem:[#allocation6 + $0x360] sm:$0xff] }
 0x114   :  { %v148_v54 = vmax.f32 %v1930_v50, 0.0  ;;  %v1624_v49 = vpack.c.bf16 %v545_v48, %v544_v47  ;;  %v359_v50 = vld [vmem:[#allocation6 + $0x358] sm:$0xff]  ;;  %v1676_v48 = vpack.c.bf16 %v735_v45, %v734_v44 }
 0x115   :  { %v147_v53 = vmax.f32 %v1932_v52, 0.0  ;;  %v1596_v52 = vpack.c.bf16 %v360_v51, %v359_v50  ;;  %v737_v50 = vld [vmem:[#allocation6 + $0x160] sm:$0xff]  ;;  %v929_v45 = vld [vmem:[#allocation6 + $0x418] sm:$0xff] }
 0x117   :  { %1241 = vmatprep.mubr.f32.mxu1 %v147_v53 }
 0x118   :  { %1242 = vmatmul.mubr.f32.vlgmr.msra.gmra.mrb[2].mxu1 %v148_v54 }
 0x119   :  { %1571 = vmatpush3.bf16.msra.mxu1 %v1568_v3  ;;  %v638_v3 = vld [vmem:[#allocation6 + $0xc0] sm:$0xff] }
 0x11a   :  { %1573 = vmatprep.subr.bf16.mxu1 %v1572_v5 }
 0x11d   :  { %1575 = vmatpush3.bf16.msra.mxu1 %v1572_v5 }
 0x11e   :  { %1577 = vmatprep.subr.bf16.mxu1 %v1576_v8 }
 0x121   :  { %1579 = vmatpush3.bf16.msra.mxu1 %v1576_v8  ;;  %v1644_v8 = vpack.c.bf16 %v639_v4, %v638_v3  ;;  %v827_v3 = vld [vmem:[#allocation6 + $0x370] sm:$0xff]  ;;  %v828_v4 = vld [vmem:[#allocation6 + $0x378] sm:$0xff] }
 0x122   :  { %1581 = vmatprep.subr.bf16.mxu1 %v1580_v11 }
 0x125   :  { %1583 = vmatpush3.bf16.msra.mxu1 %v1580_v11  ;;  %v1038_v11 = vld [vmem:[#allocation6 + $0x20] ss:$0 sm:$0xff] }
 0x126   :  { %1585 = vmatprep.subr.bf16.mxu1 %v1584_v14 }
 0x129   :  { %1587 = vmatpush3.bf16.msra.mxu1 %v1584_v14  ;;  %v642_v14 = vld [vmem:[#allocation6 + $0xe0] sm:$0xff] }
 0x12a   :  { %1589 = vmatprep.subr.bf16.mxu1 %v1588_v17  ;;  %v1652_v19 = vpack.c.bf16 %v643_v15, %v642_v14  ;;  %v835_v15 = vld [vmem:[#allocation6 + $0x3b0] sm:$0xff] }
 0x12d   :  { %1591 = vmatpush3.bf16.msra.mxu1 %v1588_v17 }
 0x12e   :  { %1593 = vmatprep.subr.bf16.mxu1 %v1592_v20 }
 0x131   :  { %1595 = vmatpush3.bf16.msra.mxu1 %v1592_v20 }
 0x132   :  { %1597 = vmatprep.subr.bf16.mxu1 %v1596_v52 }
 0x135   :  { %1599 = vmatpush3.bf16.msra.mxu1 %v1596_v52  ;;  %v738_v52 = vld [vmem:[#allocation6 + $0x168] sm:$0xff] }
 0x1eb   :  { %v1243_v22 = vpop.f32.mrb[2].mxu1 }
 0x1ec   :  { %v242_v23 = vadd.f32 %v1243_v22, %v1035_v21  ;;  %v236_v24 = vpop.f32.mrb[3].mxu1  ;;  %v645_v22 = vld [vmem:[#allocation6 + $0xf8] sm:$0xff] }
 0x1ed   :  { %v237_v25 = vadd.f32 %v1035_v21, %v236_v24  ;;  %v644_v21 = vld [vmem:[#allocation6 + $0xf0] sm:$0xff] }
 0x1ee   :  { %v246_v26 = vmax.f32 %v242_v23, 0.0  ;;  %v1656_v24 = vpack.c.bf16 %v645_v22, %v644_v21  ;;  %v839_v21 = vld [vmem:[#allocation6 + $0x3d0] sm:$0xff]  ;;  %v840_v22 = vld [vmem:[#allocation6 + $0x3d8] sm:$0xff] }
 0x1ef   :  { %v245_v27 = vmax.f32 %v237_v25, 0.0  ;;  %v646_v25 = vld [vmem:[#allocation6 + $0x100] sm:$0xff] }
 0x1f0   :  { %v248_v31 = vadd.f32 %v246_v26, %v148_v54  ;;  %v547_v54 = vld [vmem:[#allocation6 + $0x80] sm:$0xff]  ;;  %v647_v26 = vld [vmem:[#allocation6 + $0x108] sm:$0xff] }
 0x1f1   :  { %v247_v30 = vadd.f32 %v245_v27, %v147_v53  ;;  %v546_v53 = vld [vmem:[#allocation6 + $0x78] sm:$0xff]  ;;  %v1660_v27 = vpack.c.bf16 %v647_v26, %v646_v25 }
 0x1f2   :  { %v1628_v55 = vpack.c.bf16 %v547_v54, %v546_v53  ;;  %v739_v53 = vld [vmem:[#allocation6 + $0x170] sm:$0xff] }
 0x1f3   :  { %1276 = vmatprep.mubr.f32.mxu0 %v247_v30  ;;  %v1664_v30 = vpack.c.bf16 %v649_v29, %v648_v28  ;;  %v1684_v54 = vpack.c.bf16 %v739_v53, %v738_v52  ;;  %v841_v29 = vld [vmem:[#allocation6 + $0x3e0] sm:$0xff] }
 0x1f4   :  { %1277 = vmatmul.mubr.f32.vlgmr.msra.gmra.mrb[0].mxu0 %v248_v31  ;;  %v650_v31 = vld [vmem:[#allocation6 + $0x120] sm:$0xff] }
 0x1f5   :  { %1603 = vmatpush3.bf16.msra.mxu0 %v1600_v63  ;;  %1322 = vmatprep.mubr.msk.f32.mxu0 %vm452_vm1, %v441_v33  ;;  %v637_v63 = vld [vmem:[#allocation6 + $0xb8] sm:$0xff]  ;;  %v934_v52 = vld [vmem:[#allocation6 + $0x440] sm:$0xff] }
 0x1f6   :  { %1605 = vmatprep.subr.bf16.mxu0 %v1604_v32  ;;  %v1640_v0 = vpack.c.bf16 %v637_v63, %v636_v62  ;;  %v745_v62 = vld [vmem:[#allocation6 + $0x1a0] sm:$0xff] }
 0x1f8   :  { %1641 = vmatprep.subr.bf16.mxu1 %v1640_v0 }
 0x1f9   :  { %1607 = vmatpush3.bf16.msra.mxu0 %v1604_v32  ;;  %v651_v32 = vld [vmem:[#allocation6 + $0x128] sm:$0xff] }
 0x1fa   :  { %1609 = vmatprep.subr.bf16.mxu0 %v1608_v36  ;;  %v1668_v33 = vpack.c.bf16 %v651_v32, %v650_v31  ;;  %v925_v32 = vld [vmem:[#allocation6 + $0x3f8] sm:$0xff] }
 0x1fc   :  { %1323 = vmatmul.mubr.msk.f32.vlgmr.msra.gmra.mrb[2].mxu0 %vm452_vm1, %v442_v39 }
 0x1fd   :  { %1611 = vmatpush3.bf16.msra.mxu0 %v1608_v36  ;;  %v1672_v36 = vpack.c.bf16 %v733_v35, %v732_v34  ;;  %v1037_v35 = vld [vmem:[#allocation6 + $0x368] ss:$0 sm:$0xff] }
 0x1fe   :  { %1613 = vmatprep.subr.bf16.mxu0 %v1612_v40 }
 0x201   :  { %1615 = vmatpush3.bf16.msra.mxu0 %v1612_v40 }
 0x202   :  { %1617 = vmatprep.subr.bf16.mxu0 %v1616_v43 }
 0x205   :  { %1619 = vmatpush3.bf16.msra.mxu0 %v1616_v43 }
 0x206   :  { %1621 = vmatprep.subr.bf16.mxu0 %v1620_v46 }
 0x209   :  { %1623 = vmatpush3.bf16.msra.mxu0 %v1620_v46 }
 0x20a   :  { %1625 = vmatprep.subr.bf16.mxu0 %v1624_v49 }
 0x20d   :  { %1627 = vmatpush3.bf16.msra.mxu0 %v1624_v49  ;;  %v736_v49 = vld [vmem:[#allocation6 + $0x158] sm:$0xff] }
 0x20e   :  { %1629 = vmatprep.subr.bf16.mxu0 %v1628_v55  ;;  %v1680_v51 = vpack.c.bf16 %v737_v50, %v736_v49  ;;  %v932_v49 = vld [vmem:[#allocation6 + $0x430] sm:$0xff] }
 0x211   :  { %1631 = vmatpush3.bf16.msra.mxu0 %v1628_v55  ;;  %v740_v55 = vld [vmem:[#allocation6 + $0x178] sm:$0xff] }
 0x212   :  { %1633 = vmatprep.subr.bf16.mxu0 %v1632_v58  ;;  %v1688_v57 = vpack.c.bf16 %v741_v56, %v740_v55  ;;  %v936_v55 = vld [vmem:[#allocation6 + $0x450] sm:$0xff] }
 0x215   :  { %1635 = vmatpush3.bf16.msra.mxu0 %v1632_v58  ;;  %v742_v58 = vld [vmem:[#allocation6 + $0x188] sm:$0xff] }
 0x216   :  { %1637 = vmatprep.subr.bf16.mxu0 %v1636_v61  ;;  %v1692_v60 = vpack.c.bf16 %v743_v59, %v742_v58  ;;  %v938_v58 = vld [vmem:[#allocation6 + $0x460] sm:$0xff] }
 0x219   :  { %1639 = vmatpush3.bf16.msra.mxu0 %v1636_v61  ;;  %v744_v61 = vld [vmem:[#allocation6 + $0x198] sm:$0xff] }
 0x21a   :  { %v1696_v63 = vpack.c.bf16 %v745_v62, %v744_v61  ;;  %v940_v61 = vld [vmem:[#allocation6 + $0x470] sm:$0xff] }
 0x2c7   :  { %v1278_v2 = vpop.f32.mrb[0].mxu0 }
 0x2c8   :  { %v336_v5 = vpop.f32.mrb[1].mxu0  ;;  %v342_v7 = vadd.f32 %v1278_v2, %v1036_v1 }
 0x2c9   :  { %v337_v6 = vadd.f32 %v1036_v1, %v336_v5  ;;  %v747_v1 = vld [vmem:[#allocation6 + $0x1b0] sm:$0xff]  ;;  %v829_v5 = vld [vmem:[#allocation6 + $0x380] sm:$0xff] }
 0x2cb   :  { %1311 = vmatprep.mubr.f32.mxu1 %v337_v6  ;;  %v1704_v6 = vpack.c.bf16 %v828_v4, %v827_v3 }
 0x2cc   :  { %1312 = vmatmul.mubr.f32.vlgmr.msra.gmra.mrb[4].mxu1 %v342_v7  ;;  %v830_v7 = vld [vmem:[#allocation6 + $0x388] sm:$0xff] }
 0x2cd   :  { %1643 = vmatpush3.bf16.msra.mxu1 %v1640_v0  ;;  %v746_v0 = vld [vmem:[#allocation6 + $0x1a8] sm:$0xff]  ;;  %1705 = vmatprep.subr.bf16.mxu0 %v1704_v6 }
 0x2ce   :  { %1645 = vmatprep.subr.bf16.mxu1 %v1644_v8  ;;  %v1700_v2 = vpack.c.bf16 %v747_v1, %v746_v0 }
 0x2cf   :  { %v1324_v13 = vpop.f32.mrb[2].mxu0 }
 0x2d0   :  { %v531_v16 = vadd.f32 %v1324_v13, %v1038_v11  ;;  %v525_v17 = vpop.f32.mrb[3].mxu0  ;;  %v834_v13 = vld [vmem:[#allocation6 + $0x3a8] sm:$0xff] }
 0x2d1   :  { %v526_v18 = vadd.f32 %v1038_v11, %v525_v17  ;;  %1647 = vmatpush3.bf16.msra.mxu1 %v1644_v8  ;;  %v1708_v8 = vpack.c.bf16 %v830_v7, %v829_v5  ;;  %v1712_v11 = vpack.c.bf16 %v832_v10, %v831_v9 }
 0x2d2   :  { %1649 = vmatprep.subr.bf16.mxu1 %v1648_v12  ;;  %v535_v23 = vmax.f32 %v531_v16, 0.0  ;;  %v836_v16 = vld [vmem:[#allocation6 + $0x3b8] sm:$0xff] }
 0x2d3   :  { %v534_v20 = vmax.f32 %v526_v18, 0.0  ;;  %v1720_v17 = vpack.c.bf16 %v836_v16, %v835_v15  ;;  %v837_v18 = vld [vmem:[#allocation6 + $0x3c0] sm:$0xff] }
 0x2d5   :  { %1357 = vmatprep.mubr.f32.mxu0 %v534_v20  ;;  %1651 = vmatpush3.bf16.msra.mxu1 %v1648_v12  ;;  %v833_v12 = vld [vmem:[#allocation6 + $0x3a0] sm:$0xff] }
 0x2d6   :  { %1358 = vmatmul.mubr.f32.vlgmr.msra.gmra.mrb[4].mxu0 %v535_v23  ;;  %1653 = vmatprep.subr.bf16.mxu1 %v1652_v19  ;;  %v1716_v14 = vpack.c.bf16 %v834_v13, %v833_v12 }
 0x2d7   :  { %1707 = vmatpush3.bf16.msra.mxu0 %v1704_v6  ;;  %v1044_v6 = vld [vmem:[#allocation6 + $0x478] ss:$0 sm:$0xff] }
 0x2d8   :  { %1709 = vmatprep.subr.bf16.mxu0 %v1708_v8 }
 0x2d9   :  { %1655 = vmatpush3.bf16.msra.mxu1 %v1652_v19  ;;  %v838_v19 = vld [vmem:[#allocation6 + $0x3c8] sm:$0xff] }
 0x2da   :  { %1657 = vmatprep.subr.bf16.mxu1 %v1656_v24 }
 0x2db   :  { %1711 = vmatpush3.bf16.msra.mxu0 %v1708_v8 }
 0x2dc   :  { %1713 = vmatprep.subr.bf16.mxu0 %v1712_v11 }
 0x2dd   :  { %1659 = vmatpush3.bf16.msra.mxu1 %v1656_v24  ;;  %v1042_v24 = vld [vmem:[#allocation6 + $0x130] ss:$0 sm:$0xff] }
 0x2de   :  { %1661 = vmatprep.subr.bf16.mxu1 %v1660_v27 }
 0x2df   :  { %1715 = vmatpush3.bf16.msra.mxu0 %v1712_v11 }
 0x2e0   :  { %1717 = vmatprep.subr.bf16.mxu0 %v1716_v14 }
 0x2e1   :  { %1663 = vmatpush3.bf16.msra.mxu1 %v1660_v27 }
 0x2e2   :  { %1665 = vmatprep.subr.bf16.mxu1 %v1664_v30 }
 0x2e3   :  { %1719 = vmatpush3.bf16.msra.mxu0 %v1716_v14 }
 0x2e4   :  { %1721 = vmatprep.subr.bf16.mxu0 %v1720_v17 }
 0x2e5   :  { %1667 = vmatpush3.bf16.msra.mxu1 %v1664_v30  ;;  %v842_v30 = vld [vmem:[#allocation6 + $0x3e8] sm:$0xff] }
 0x2e6   :  { %1669 = vmatprep.subr.bf16.mxu1 %v1668_v33  ;;  %v1732_v31 = vpack.c.bf16 %v842_v30, %v841_v29 }
 0x2e7   :  { %1723 = vmatpush3.bf16.msra.mxu0 %v1720_v17 }
 0x2e9   :  { %1671 = vmatpush3.bf16.msra.mxu1 %v1668_v33  ;;  %v926_v33 = vld [vmem:[#allocation6 + $0x400] sm:$0xff] }
 0x2ea   :  { %1673 = vmatprep.subr.bf16.mxu1 %v1672_v36  ;;  %v1736_v34 = vpack.c.bf16 %v926_v33, %v925_v32 }
 0x3a9   :  { %v1359_v38 = vpop.f32.mrb[4].mxu0 }
 0x3aa   :  { %v629_v39 = vadd.f32 %v1359_v38, %v1041_v37  ;;  %v623_v40 = vpop.f32.mrb[5].mxu0 }
 0x3ab   :  { %v624_v41 = vadd.f32 %v1041_v37, %v623_v40  ;;  %v927_v40 = vld [vmem:[#allocation6 + $0x408] sm:$0xff] }
 0x3ac   :  { %v633_v42 = vmax.f32 %v629_v39, 0.0 }
 0x3ad   :  { %v632_v43 = vmax.f32 %v624_v41, 0.0  ;;  %v928_v41 = vld [vmem:[#allocation6 + $0x410] sm:$0xff] }
 0x3ae   :  { %v635_v47 = vadd.f32 %v633_v42, %v535_v23  ;;  %v1728_v23 = vpack.c.bf16 %v840_v22, %v839_v21  ;;  %v1740_v44 = vpack.c.bf16 %v928_v41, %v927_v40 }
 0x3af   :  { %v634_v46 = vadd.f32 %v632_v43, %v534_v20  ;;  %v1724_v20 = vpack.c.bf16 %v838_v19, %v837_v18 }
 0x3b1   :  { %1392 = vmatprep.mubr.f32.mxu1 %v634_v46  ;;  %1725 = vmatprep.subr.bf16.mxu0 %v1724_v20  ;;  %v930_v46 = vld [vmem:[#allocation6 + $0x420] sm:$0xff] }
 0x3b2   :  { %1393 = vmatmul.mubr.f32.vlgmr.msra.gmra.mrb[6].mxu1 %v635_v47  ;;  %1727 = vmatpush3.bf16.msra.mxu0 %v1724_v20  ;;  %v1744_v47 = vpack.c.bf16 %v930_v46, %v929_v45 }
 0x3b3   :  { %1675 = vmatpush3.bf16.msra.mxu1 %v1672_v36  ;;  %1729 = vmatprep.subr.bf16.mxu0 %v1728_v23 }
 0x3b4   :  { %1677 = vmatprep.subr.bf16.mxu1 %v1676_v48 }
 0x3b6   :  { %1731 = vmatpush3.bf16.msra.mxu0 %v1728_v23 }
 0x3b7   :  { %1679 = vmatpush3.bf16.msra.mxu1 %v1676_v48  ;;  %1733 = vmatprep.subr.bf16.mxu0 %v1732_v31  ;;  %v931_v48 = vld [vmem:[#allocation6 + $0x428] sm:$0xff] }
 0x3b8   :  { %1681 = vmatprep.subr.bf16.mxu1 %v1680_v51  ;;  %v1748_v50 = vpack.c.bf16 %v932_v49, %v931_v48 }
 0x3ba   :  { %1735 = vmatpush3.bf16.msra.mxu0 %v1732_v31 }
 0x3bb   :  { %1683 = vmatpush3.bf16.msra.mxu1 %v1680_v51  ;;  %1737 = vmatprep.subr.bf16.mxu0 %v1736_v34  ;;  %v933_v51 = vld [vmem:[#allocation6 + $0x438] sm:$0xff] }
 0x3bc   :  { %1685 = vmatprep.subr.bf16.mxu1 %v1684_v54  ;;  %v1752_v53 = vpack.c.bf16 %v934_v52, %v933_v51 }
 0x3bf   :  { %1687 = vmatpush3.bf16.msra.mxu1 %v1684_v54  ;;  %v935_v54 = vld [vmem:[#allocation6 + $0x448] sm:$0xff] }
 0x3c0   :  { %1689 = vmatprep.subr.bf16.mxu1 %v1688_v57  ;;  %v1756_v56 = vpack.c.bf16 %v936_v55, %v935_v54 }
 0x3c3   :  { %1691 = vmatpush3.bf16.msra.mxu1 %v1688_v57  ;;  %v937_v57 = vld [vmem:[#allocation6 + $0x458] sm:$0xff] }
 0x3c4   :  { %1693 = vmatprep.subr.bf16.mxu1 %v1692_v60  ;;  %v1760_v59 = vpack.c.bf16 %v938_v58, %v937_v57 }
 0x3c7   :  { %1695 = vmatpush3.bf16.msra.mxu1 %v1692_v60  ;;  %v939_v60 = vld [vmem:[#allocation6 + $0x468] sm:$0xff] }
 0x3c8   :  { %1697 = vmatprep.subr.bf16.mxu1 %v1696_v63  ;;  %v1764_v62 = vpack.c.bf16 %v940_v61, %v939_v60 }
 0x3cb   :  { %1699 = vmatpush3.bf16.msra.mxu1 %v1696_v63  ;;  %v1043_v63 = vld [vmem:[#allocation6 + $0x3f0] ss:$0 sm:$0xff] }
 0x3cc   :  { %1701 = vmatprep.subr.bf16.mxu1 %v1700_v2 }
 0x3cf   :  { %1703 = vmatpush3.bf16.msra.mxu1 %v1700_v2 }
 0x485   :  { %v1394_v25 = vpop.f32.mrb[6].mxu1 }
 0x486   :  { %v723_v26 = vpop.f32.mrb[7].mxu1  ;;  %v729_v28 = vadd.f32 %v1394_v25, %v1042_v24 }
 0x487   :  { %v724_v27 = vadd.f32 %v1042_v24, %v723_v26 }
 0x489   :  { %1427 = vmatprep.mubr.f32.mxu1 %v724_v27 }
 0x48a   :  { %1428 = vmatmul.mubr.f32.vlgmr.msra.gmra.mrb[4].mxu1 %v729_v28 }
 0x55d   :  { %v1429_v36 = vpop.f32.mrb[4].mxu1 }
 0x55e   :  { %v1768_v37 = vadd.f32 %v1429_v36, %v1037_v35  ;;  %v814_v38 = vpop.f32.mrb[5].mxu1 }
 0x55f   :  { %v1769_v39 = vadd.f32 %v1037_v35, %v814_v38 }
 0x560   :  { %v826_v43 = vmax.f32 %v1768_v37, 0.0 }
 0x561   :  { %v825_v42 = vmax.f32 %v1769_v39, 0.0 }
 0x563   :  { %1462 = vmatprep.mubr.f32.mxu0 %v825_v42 }
 0x564   :  { %1463 = vmatmul.mubr.f32.vlgmr.msra.gmra.mrb[6].mxu0 %v826_v43 }
 0x565   :  { %1739 = vmatpush3.bf16.msra.mxu0 %v1736_v34 }
 0x566   :  { %1741 = vmatprep.subr.bf16.mxu0 %v1740_v44 }
 0x569   :  { %1743 = vmatpush3.bf16.msra.mxu0 %v1740_v44 }
 0x56a   :  { %1745 = vmatprep.subr.bf16.mxu0 %v1744_v47 }
 0x56d   :  { %1747 = vmatpush3.bf16.msra.mxu0 %v1744_v47 }
 0x56e   :  { %1749 = vmatprep.subr.bf16.mxu0 %v1748_v50 }
 0x571   :  { %1751 = vmatpush3.bf16.msra.mxu0 %v1748_v50 }
 0x572   :  { %1753 = vmatprep.subr.bf16.mxu0 %v1752_v53 }
 0x575   :  { %1755 = vmatpush3.bf16.msra.mxu0 %v1752_v53 }
 0x576   :  { %1757 = vmatprep.subr.bf16.mxu0 %v1756_v56 }
 0x579   :  { %1759 = vmatpush3.bf16.msra.mxu0 %v1756_v56 }
 0x57a   :  { %1761 = vmatprep.subr.bf16.mxu0 %v1760_v59 }
 0x57d   :  { %1763 = vmatpush3.bf16.msra.mxu0 %v1760_v59 }
 0x57e   :  { %1765 = vmatprep.subr.bf16.mxu0 %v1764_v62 }
 0x581   :  { %1767 = vmatpush3.bf16.msra.mxu0 %v1764_v62 }
 0x637   :  { %v1464_v0 = vpop.f32.mrb[6].mxu0 }
 0x638   :  { %v920_v1 = vadd.f32 %v1464_v0, %v1043_v63  ;;  %v914_v2 = vpop.f32.mrb[7].mxu0 }
 0x639   :  { %v915_v3 = vadd.f32 %v1043_v63, %v914_v2 }
 0x63a   :  { %v924_v5 = vmax.f32 %v920_v1, 0.0 }
 0x63b   :  { %v923_v4 = vmax.f32 %v915_v3, 0.0 }
 0x63d   :  { %1497 = vmatprep.mubr.f32.mxu0 %v923_v4 }
 0x63e   :  { %1498 = vmatmul.mubr.f32.vlgmr.msra.gmra.mrb[8].mxu0 %v924_v5 }
 0x711   :  { %v1499_v7 = vpop.f32.mrb[8].mxu0 }
 0x712   :  { %v1018_v8 = vadd.f32 %v1499_v7, %v1044_v6  ;;  %v1012_v9 = vpop.f32.mrb[9].mxu0 }
 0x713   :  { %v1013_v10 = vadd.f32 %v1044_v6, %v1012_v9 }
 0x714   :  { %1777 = vtanh.f32 %v1018_v8 }
 0x715   :  { %1779 = vtanh.f32 %v1013_v10 }
 0x71e   :  { %v1778_v11 = vpop.eup %1777 }
 0x71f   :  { %v1780_v12 = vpop.eup %1779  ;;  %1025 = vst.msk [vmem:[%s1947_s3 + $0x8] sm:$0xff] %vm1023_vm2, %v1778_v11 }
 0x720   :  { %1024 = vst.msk [vmem:[%s1947_s3] sm:$0xff] %vm1023_vm2, %v1780_v12 }
 0x721   :  { %1030 = vsyncpa [#allocation3], 1 }
 0x722   :  { %1031 = vsyncpa [#allocation5], 1 }

</bundles_post_ra>
